<compile_context>
chip_gen: v7x
topology: tpu7x:2x2x1
jax: 0.10.0
libtpu: 0.0.40
codegen_flags: <defaults>
</compile_context>

<pallas_src>
import jax
import jax.numpy as jnp
from jax.experimental import pallas as pl
from jax.experimental.pallas import tpu as pltpu


def _round_up(x, m):
    return ((x + m - 1) // m) * m


def critic_kernel(s_ref, a_ref, w1s_ref, w1a_ref, b1_ref,
                  w2_ref, b2_ref, w3_ref, b3_ref, out_ref):
    # fc1 + relu, concat fused: x@W1 == state@W1[:S] + action@W1[S:]
    # (bf16 MXU operands, f32 accumulate; bias/ReLU on the f32 VPU path).
    h1 = (jnp.dot(s_ref[...], w1s_ref[...], preferred_element_type=jnp.float32)
          + jnp.dot(a_ref[...], w1a_ref[...], preferred_element_type=jnp.float32)
          + b1_ref[...])
    h1 = jnp.maximum(h1, 0.0)

    # fc2 + relu (activation is cast to bf16 only as the MXU operand).
    h2 = (jnp.dot(h1.astype(w2_ref.dtype), w2_ref[...],
                  preferred_element_type=jnp.float32)
          + b2_ref[...])
    h2 = jnp.maximum(h2, 0.0)

    # fc3 (out_features = 1): VPU multiply + XLU lane reduction (no 1-wide MXU
    # matmul).  w3_ref is a (1, H_pad) bf16 row; padded lanes are zero.
    v = jnp.sum(h2 * w3_ref[...].astype(jnp.float32), axis=-1)   # (tile_b,)
    # Lane-dense store: one cheap sublane->lane move, then an unmasked vst.
    out_ref[...] = (v[None, :] + b3_ref[...]).astype(out_ref.dtype)


def _choose_tile_b(B, *, max_tile_b=512, lane=128, min_grid=2):
    """Largest lane-aligned batch tile <= max_tile_b, keeping >= min_grid grid
    steps when B > lane so v7x's two TensorCores both get work (v5e/v6e have a
    single TC and simply benefit from the bigger tiles)."""
    if B <= lane:
        return lane
    tile = _round_up(pl.cdiv(B, min_grid), lane)
    return min(tile, max_tile_b)


def critic_forward(state, action, prepared_params, *, max_tile_b=512):
    """Fused Critic forward.  state: (B, S), action: (B, A) -> (B, 1) f32."""
    w1s, w1a, b1, w2, b2, w3, b3 = prepared_params
    B, S = state.shape
    A = action.shape[1]
    H_pad = w2.shape[1]

    tile_b = _choose_tile_b(B, max_tile_b=max_tile_b)
    steps = pl.cdiv(B, tile_b)
    B_pad = steps * tile_b

    # Pad the batch to a whole number of tiles (padded rows are sliced off
    # below) and cast the only B-scaling HBM traffic to the weight dtype.
    in_dtype = w1s.dtype
    if B_pad != B:
        state = jnp.pad(state, ((0, B_pad - B), (0, 0)))
        action = jnp.pad(action, ((0, B_pad - B), (0, 0)))
    state = state.astype(in_dtype)
    action = action.astype(in_dtype)

    def resident(arr):  # weights/biases: same VMEM block for every grid step
        return pl.BlockSpec(arr.shape, lambda i: (0,) * arr.ndim)

    in_specs = [
        pl.BlockSpec((tile_b, S), lambda i: (i, 0)),   # state rows
        pl.BlockSpec((tile_b, A), lambda i: (i, 0)),   # action rows
        resident(w1s), resident(w1a), resident(b1),
        resident(w2), resident(b2),
        resident(w3), resident(b3),
    ]
    # Lane-dense output slab (1, B_pad), tiled along lanes -> unmasked stores.
    out_specs = pl.BlockSpec((1, tile_b), lambda i: (0, i))

    # Rough VMEM budget (double-buffered resident weights + I/O tiles + f32
    # intermediates) with generous headroom, clamped to v7x's 64 MiB physical.
    weight_bytes = sum(int(x.size) * x.dtype.itemsize
                       for x in (w1s, w1a, b1, w2, b2, w3, b3))
    io_bytes = tile_b * (S + A) * state.dtype.itemsize + tile_b * 4
    vmem_limit = int(min(64 << 20,
                         max(4 << 20,
                             2 * (weight_bytes + io_bytes)
                             + 8 * tile_b * H_pad * 4 + (2 << 20))))

    cost = pl.CostEstimate(
        flops=int(2 * B_pad * ((S + A) * H_pad + H_pad * H_pad + H_pad)),
        transcendentals=0,
        bytes_accessed=int(B_pad * (S + A) * state.dtype.itemsize
                           + weight_bytes + B_pad * 4),
    )

    # TODO(synk): if hidden_dim ever grows past ~2k, add a K-tiled grid axis
    # for w2 instead of keeping it fully VMEM-resident (v7x has only 64 MiB).
    out = pl.pallas_call(
        critic_kernel,
        out_shape=jax.ShapeDtypeStruct((1, B_pad), jnp.float32),
        grid=(steps,),
        in_specs=in_specs,
        out_specs=out_specs,
        compiler_params=pltpu.CompilerParams(
            dimension_semantics=("parallel",),
            vmem_limit_bytes=vmem_limit),
        cost_estimate=cost,
    )(state, action, w1s, w1a, b1, w2, b2, w3, b3)

    return out[0, :B][:, None]


def init_params(key, state_dim, action_dim, hidden_dim):
    """PyTorch-style nn.Linear init (uniform +/- 1/sqrt(fan_in)).

    Weights stored as (in_features, out_features).
    """
    def linear(k, fan_in, fan_out):
        kw, kb = jax.random.split(k)
        bound = 1.0 / jnp.sqrt(jnp.float32(fan_in))
        w = jax.random.uniform(kw, (fan_in, fan_out), jnp.float32, -bound, bound)
        b = jax.random.uniform(kb, (1, fan_out), jnp.float32, -bound, bound)
        return w, b

    k1, k2, k3 = jax.random.split(key, 3)
    w1, b1 = linear(k1, state_dim + action_dim, hidden_dim)
    w2, b2 = linear(k2, hidden_dim, hidden_dim)
    w3, b3 = linear(k3, hidden_dim, 1)
    return (w1, b1, w2, b2, w3, b3)


def prepare_params(params, state_dim, *, lane=128, weight_dtype=jnp.bfloat16):
    """One-time (outside the per-step path) split + cast + pad of the weights:
      * split w1 into state / action halves (fuses the concat),
      * cast matmul weights to bf16 (biases stay f32 for the f32 VPU epilogue),
      * zero-pad the hidden dim to a multiple of 128 lanes (pad after the cast
        so padding stays exactly zero),
      * store w3 as a (1, H_pad) row for the lane reduction.
    """
    w1, b1, w2, b2, w3, b3 = params
    H = w2.shape[0]
    pad_h = _round_up(H, lane) - H

    w1s = jnp.pad(w1[:state_dim].astype(weight_dtype), ((0, 0), (0, pad_h)))
    w1a = jnp.pad(w1[state_dim:].astype(weight_dtype), ((0, 0), (0, pad_h)))
    w2p = jnp.pad(w2.astype(weight_dtype), ((0, pad_h), (0, pad_h)))
    w3p = jnp.pad(w3.T.astype(weight_dtype), ((0, 0), (0, pad_h)))   # (1, H_pad)
    b1p = jnp.pad(b1, ((0, 0), (0, pad_h)))                          # f32
    b2p = jnp.pad(b2, ((0, 0), (0, pad_h)))                          # f32
    return (w1s, w1a, b1p, w2p, b2p, w3p, b3)


if __name__ == "__main__":
    # Small shapes consistent with the module; B=256 -> 2 grid steps (so the
    # multi-tile path and v7x's two TensorCores are exercised).
    B, STATE_DIM, ACTION_DIM, HIDDEN_DIM = 256, 16, 8, 32

    key = jax.random.PRNGKey(0)
    k_params, k_state, k_action = jax.random.split(key, 3)

    params = init_params(k_params, STATE_DIM, ACTION_DIM, HIDDEN_DIM)
    prepared = prepare_params(params, STATE_DIM)

    state = jax.random.normal(k_state, (B, STATE_DIM), jnp.float32)
    action = jax.random.normal(k_action, (B, ACTION_DIM), jnp.float32)

    value = critic_forward(state, action, prepared)
    jax.block_until_ready(value)
    assert value.shape == (B, 1)

    w1, b1, w2, b2, w3, b3 = params

    # Reference 1: pure-JAX mirror of the kernel's dtype plan (bf16 operands,
    # f32 accumulation) -- tight check of the kernel plumbing.
    xb = jnp.concatenate([state, action], -1).astype(jnp.bfloat16)
    h1 = jnp.maximum(jnp.dot(xb, w1.astype(jnp.bfloat16),
                             preferred_element_type=jnp.float32) + b1, 0.0)
    h2 = jnp.maximum(jnp.dot(h1.astype(jnp.bfloat16), w2.astype(jnp.bfloat16),
                             preferred_element_type=jnp.float32) + b2, 0.0)
    ref_bf16 = h2 @ w3.astype(jnp.bfloat16).astype(jnp.float32) + b3
    assert jnp.allclose(value, ref_bf16, atol=2e-3, rtol=2e-3)

    # Reference 2: original full-f32 module -- bf16 quantization sanity check.
    x = jnp.concatenate([state, action], -1)
    h1f = jnp.maximum(x @ w1 + b1, 0.0)
    h2f = jnp.maximum(h1f @ w2 + b2, 0.0)
    ref_f32 = h2f @ w3 + b3
    assert jnp.allclose(value, ref_f32, atol=5e-2, rtol=5e-2)

    print("KERNEL_OK")
</pallas_src>

<mosaic_0001>
module attributes {stable_mosaic.version = 11 : i64} {
  func.func @critic_kernel(%arg0: i32, %arg1: memref<128x16xbf16, #tpu.memory_space<vmem>>, %arg2: memref<128x8xbf16, #tpu.memory_space<vmem>>, %arg3: memref<16x128xbf16, #tpu.memory_space<vmem>>, %arg4: memref<8x128xbf16, #tpu.memory_space<vmem>>, %arg5: memref<1x128xf32, #tpu.memory_space<vmem>>, %arg6: memref<128x128xbf16, #tpu.memory_space<vmem>>, %arg7: memref<1x128xf32, #tpu.memory_space<vmem>>, %arg8: memref<1x128xbf16, #tpu.memory_space<vmem>>, %arg9: memref<1x1xf32, #tpu.memory_space<vmem>>, %arg10: memref<1x128xf32, #tpu.memory_space<vmem>>) attributes {dimension_semantics = [#tpu.dimension_semantics<parallel>], iteration_bounds = array<i64: 2>, scalar_prefetch = 0 : i64, scratch_operands = 0 : i64, tpu.core_type = #tpu.core_type<tc>, window_params = [{transform_indices = @transform_0, window_bounds = array<i64: 128, 16>}, {transform_indices = @transform_1, window_bounds = array<i64: 128, 8>}, {pipeline_mode = #tpu.pipeline_mode<synchronous>, transform_indices = @transform_2, window_bounds = array<i64: 16, 128>}, {pipeline_mode = #tpu.pipeline_mode<synchronous>, transform_indices = @transform_3, window_bounds = array<i64: 8, 128>}, {pipeline_mode = #tpu.pipeline_mode<synchronous>, transform_indices = @transform_4, window_bounds = array<i64: 1, 128>}, {pipeline_mode = #tpu.pipeline_mode<synchronous>, transform_indices = @transform_5, window_bounds = array<i64: 128, 128>}, {pipeline_mode = #tpu.pipeline_mode<synchronous>, transform_indices = @transform_6, window_bounds = array<i64: 1, 128>}, {pipeline_mode = #tpu.pipeline_mode<synchronous>, transform_indices = @transform_7, window_bounds = array<i64: 1, 128>}, {pipeline_mode = #tpu.pipeline_mode<synchronous>, transform_indices = @transform_8, window_bounds = array<i64: 1, 1>}, {transform_indices = @transform_9, window_bounds = array<i64: 1, 128>}]} {
    %c0 = arith.constant 0 : index
    %c0_0 = arith.constant 0 : index
    %0 = vector.load %arg1[%c0, %c0_0] : memref<128x16xbf16, #tpu.memory_space<vmem>>, vector<128x16xbf16>
    %c0_1 = arith.constant 0 : index
    %c0_2 = arith.constant 0 : index
    %1 = vector.load %arg3[%c0_1, %c0_2] : memref<16x128xbf16, #tpu.memory_space<vmem>>, vector<16x128xbf16>
    %cst = arith.constant dense<0.000000e+00> : vector<128x128xf32>
    %2 = tpu.matmul %0, %1, %cst {dimension_numbers = #tpu.dot_dimension_numbers<[1], [0], [0], [1], [0, 0, 1, 1], [], []>} : vector<128x16xbf16>, vector<16x128xbf16>, vector<128x128xf32> -> vector<128x128xf32>
    %c0_3 = arith.constant 0 : index
    %c0_4 = arith.constant 0 : index
    %3 = vector.load %arg2[%c0_3, %c0_4] : memref<128x8xbf16, #tpu.memory_space<vmem>>, vector<128x8xbf16>
    %c0_5 = arith.constant 0 : index
    %c0_6 = arith.constant 0 : index
    %4 = vector.load %arg4[%c0_5, %c0_6] : memref<8x128xbf16, #tpu.memory_space<vmem>>, vector<8x128xbf16>
    %cst_7 = arith.constant dense<0.000000e+00> : vector<128x128xf32>
    %5 = tpu.matmul %3, %4, %cst_7 {dimension_numbers = #tpu.dot_dimension_numbers<[1], [0], [0], [1], [0, 0, 1, 1], [], []>} : vector<128x8xbf16>, vector<8x128xbf16>, vector<128x128xf32> -> vector<128x128xf32>
    %6 = arith.addf %2, %5 : vector<128x128xf32>
    %c0_8 = arith.constant 0 : index
    %c0_9 = arith.constant 0 : index
    %7 = vector.load %arg5[%c0_8, %c0_9] : memref<1x128xf32, #tpu.memory_space<vmem>>, vector<1x128xf32>
    %8 = vector.broadcast %7 : vector<1x128xf32> to vector<128x128xf32>
    %9 = arith.addf %6, %8 : vector<128x128xf32>
    %cst_10 = arith.constant 0.000000e+00 : f32
    %10 = vector.broadcast %cst_10 : f32 to vector<128x128xf32>
    %11 = arith.maximumf %9, %10 : vector<128x128xf32>
    %12 = arith.truncf %11 : vector<128x128xf32> to vector<128x128xbf16>
    %c0_11 = arith.constant 0 : index
    %c0_12 = arith.constant 0 : index
    %13 = vector.load %arg6[%c0_11, %c0_12] : memref<128x128xbf16, #tpu.memory_space<vmem>>, vector<128x128xbf16>
    %cst_13 = arith.constant dense<0.000000e+00> : vector<128x128xf32>
    %14 = tpu.matmul %12, %13, %cst_13 {dimension_numbers = #tpu.dot_dimension_numbers<[1], [0], [0], [1], [0, 0, 1, 1], [], []>} : vector<128x128xbf16>, vector<128x128xbf16>, vector<128x128xf32> -> vector<128x128xf32>
    %c0_14 = arith.constant 0 : index
    %c0_15 = arith.constant 0 : index
    %15 = vector.load %arg7[%c0_14, %c0_15] : memref<1x128xf32, #tpu.memory_space<vmem>>, vector<1x128xf32>
    %16 = vector.broadcast %15 : vector<1x128xf32> to vector<128x128xf32>
    %17 = arith.addf %14, %16 : vector<128x128xf32>
    %cst_16 = arith.constant 0.000000e+00 : f32
    %18 = vector.broadcast %cst_16 : f32 to vector<128x128xf32>
    %19 = arith.maximumf %17, %18 : vector<128x128xf32>
    %c0_17 = arith.constant 0 : index
    %c0_18 = arith.constant 0 : index
    %20 = vector.load %arg8[%c0_17, %c0_18] : memref<1x128xbf16, #tpu.memory_space<vmem>>, vector<1x128xbf16>
    %21 = arith.extf %20 : vector<1x128xbf16> to vector<1x128xf32>
    %22 = vector.broadcast %21 : vector<1x128xf32> to vector<128x128xf32>
    %23 = arith.mulf %19, %22 : vector<128x128xf32>
    %cst_19 = arith.constant dense<0.000000e+00> : vector<128xf32>
    %24 = vector.multi_reduction <add>, %23, %cst_19 [1] : vector<128x128xf32> to vector<128xf32>
    %25 = vector.shape_cast %24 : vector<128xf32> to vector<1x128xf32>
    %c0_20 = arith.constant 0 : index
    %c0_21 = arith.constant 0 : index
    %26 = vector.load %arg9[%c0_20, %c0_21] : memref<1x1xf32, #tpu.memory_space<vmem>>, vector<1x1xf32>
    %27 = vector.broadcast %26 : vector<1x1xf32> to vector<1x128xf32>
    %28 = arith.addf %25, %27 : vector<1x128xf32>
    %c0_22 = arith.constant 0 : index
    %c0_23 = arith.constant 0 : index
    %29 = vector.load %arg10[%c0_22, %c0_23] : memref<1x128xf32, #tpu.memory_space<vmem>>, vector<1x128xf32>
    tpu.vector_store %arg10[%c0_22, %c0_23], %28 {strides = array<i32>} : memref<1x128xf32, #tpu.memory_space<vmem>>, vector<1x128xf32>,
    return
  }
  func.func @transform_0(%arg0: i32) -> (i32, i32) {
    %c0_i32 = arith.constant 0 : i32
    %c0_i32_0 = arith.constant 0 : i32
    return %arg0, %c0_i32 : i32, i32
  }
  func.func @transform_1(%arg0: i32) -> (i32, i32) {
    %c0_i32 = arith.constant 0 : i32
    %c0_i32_0 = arith.constant 0 : i32
    return %arg0, %c0_i32 : i32, i32
  }
  func.func @transform_2(%arg0: i32) -> (i32, i32) {
    %c0_i32 = arith.constant 0 : i32
    %c0_i32_0 = arith.constant 0 : i32
    %c0_i32_1 = arith.constant 0 : i32
    return %c0_i32, %c0_i32_0 : i32, i32
  }
  func.func @transform_3(%arg0: i32) -> (i32, i32) {
    %c0_i32 = arith.constant 0 : i32
    %c0_i32_0 = arith.constant 0 : i32
    %c0_i32_1 = arith.constant 0 : i32
    return %c0_i32, %c0_i32_0 : i32, i32
  }
  func.func @transform_4(%arg0: i32) -> (i32, i32) {
    %c0_i32 = arith.constant 0 : i32
    %c0_i32_0 = arith.constant 0 : i32
    %c0_i32_1 = arith.constant 0 : i32
    return %c0_i32, %c0_i32_0 : i32, i32
  }
  func.func @transform_5(%arg0: i32) -> (i32, i32) {
    %c0_i32 = arith.constant 0 : i32
    %c0_i32_0 = arith.constant 0 : i32
    %c0_i32_1 = arith.constant 0 : i32
    return %c0_i32, %c0_i32_0 : i32, i32
  }
  func.func @transform_6(%arg0: i32) -> (i32, i32) {
    %c0_i32 = arith.constant 0 : i32
    %c0_i32_0 = arith.constant 0 : i32
    %c0_i32_1 = arith.constant 0 : i32
    return %c0_i32, %c0_i32_0 : i32, i32
  }
  func.func @transform_7(%arg0: i32) -> (i32, i32) {
    %c0_i32 = arith.constant 0 : i32
    %c0_i32_0 = arith.constant 0 : i32
    %c0_i32_1 = arith.constant 0 : i32
    return %c0_i32, %c0_i32_0 : i32, i32
  }
  func.func @transform_8(%arg0: i32) -> (i32, i32) {
    %c0_i32 = arith.constant 0 : i32
    %c0_i32_0 = arith.constant 0 : i32
    %c0_i32_1 = arith.constant 0 : i32
    return %c0_i32, %c0_i32_0 : i32, i32
  }
  func.func @transform_9(%arg0: i32) -> (i32, i32) {
    %c0_i32 = arith.constant 0 : i32
    %c0_i32_0 = arith.constant 0 : i32
    return %c0_i32, %arg0 : i32, i32
  }
}

</mosaic_0001>

<bundles_post_ra>
// kernel: tpu_custom_call.1
= control target key start
LH: loop header
LB: loop body
LE: loop exit
PB: predicated region body
PF: predicated region fallthrough
CT: control target
= control target key end

     0   :  { %s1886_s0 = inlined_call_operand.vmem [shape: bf16[256,16], index: 0, kind: input, shape index: {}]   ;;  %s1887_s1 = inlined_call_operand.vmem [shape: bf16[256,8], index: 1, kind: input, shape index: {}]   ;;  %s1888_s2 = inlined_call_operand.vmem [shape: bf16[16,128], index: 2, kind: input, shape index: {}]   ;;  %s1889_s3 = inlined_call_operand.vmem [shape: bf16[8,128], index: 3, kind: input, shape index: {}]   ;;  %s1890_s4 = inlined_call_operand.vmem [shape: f32[1,128], index: 4, kind: input, shape index: {}]   ;;  %s1891_s5 = inlined_call_operand.vmem [shape: bf16[128,128], index: 5, kind: input, shape index: {}]   ;;  %s1892_s6 = inlined_call_operand.vmem [shape: f32[1,128], index: 6, kind: input, shape index: {}]   ;;  %s1893_s7 = inlined_call_operand.vmem [shape: bf16[1,128], index: 7, kind: input, shape index: {}]   ;;  %s1894_s8 = inlined_call_operand.<no memory space> [shape: f32[1,1], index: 8, kind: input, shape index: {}]   ;;  %s1895_s9 = inlined_call_operand.hbm [shape: f32[1,256], index: 9, kind: output, shape index: {}]  }
   0x1   :  { %v14_v0 = vstv %s1894_s8 }
   0x2   :  { %15 = vst [vmem:[#allocation2] sm:$0x1] %v14_v0 }
   0x3   :  { %16 = vsyncpa [#allocation4], 0 }
   0x4   :  { %18 = vsyncpa [#allocation4 + $0x1], 0  ;;  %s1605_s11 = smov 0   ;;  %s1607_s12 = smov 0  }
   0x5   :  { %s1609_s13 = smov 0   ;;  %s1611_s14 = smov 0  }
   0x6 LB: > { %s1245_s8 = sadd.s32 4294967295, %s1548_s14   ;;  %s1246_s15 = sadd.s32 4294967294, %s1548_s14   ;;  %s1548_s14 = sphi %s1611_s14, %s1901_s14   ;;  %s1544_s13 = sphi %s1609_s13, %s1900_s13   ;;  %s1540_s12 = sphi %s1607_s12, %s1899_s12   ;;  %s1536_s11 = sphi %s1605_s11, %s1898_s11  }
   0x7   : > { %s1628_s16 = sadd.s32 1, %s1548_s14   ;;  %s230_s17 = sadd.s32 1, %s1544_s13 }
   0x8   : > { %s227_s18 = ssub.s32 %s1548_s14, %s1628_s16  ;;  %p240_p0 = scmp.ne.s32.totalorder %s1544_s13, %s1540_s12 }
   0x9   : > { %p228_p1 = scmp.eq.s32.totalorder %s227_s18, 0  ;;  %p241_p2 = scmp.eq.s32.totalorder %s1245_s8, 1 }
   0xa   : > { %p246_p3 = scmp.ne.s32.totalorder %s1540_s12, %s1536_s11  ;;  %p247_p4 = scmp.eq.s32.totalorder %s1246_s15, 1 }
   0xb   : > { %s1638_s19 = scalar_select %p228_p1, %s1544_s13, %s230_s17  }
   0xc   : > { %p1640_p5 = por %p241_p2, %p240_p0  ;;  %p1644_p6 = por %p247_p4, %p246_p3 }
   0xd   : > { %p1249_p7 = scmp.ge.s32.totalorder %s1548_s14, 1  ;;  %p304_p8 = scmp.lt.s32.totalorder %s1548_s14, 3 }
   0xf   : > { %p305_p9 = pnand %p1249_p7, %p304_p8 }
  0x10   : > { %v391_v1 = vld [vmem:[%s1889_s3] sm:$0xf] (!%p305_p9)  ;;  %vm457_vm0 = vcmask (!%p305_p9), 1043456   ;;  %s1653_s24 = sshll.u32 (!%p305_p9), %s1245_s8, 4  ;;  %v1479_v5 = vld [vmem:[%s1891_s5 + $0x8] sm:$0xff] (!%p305_p9)   ;;  %vm432_vm1 = vcmask (!%p305_p9), 64512  }
  0x11   : > { %308 = sbr.rel (%p305_p9) target bundleno = 731 (0x2db), region = 56  ;;  %v1462_v2 = vld [vmem:[%s1888_s2] sm:$0xff] (!%p305_p9)   ;;  %1418 = vmatprep.subr.msk.bf16.mxu0 (!%p305_p9), %vm457_vm0, %v391_v1  ;;  %v459_v3 = vsel (!%p305_p9), %vm457_vm0, %v391_v1, 0  ;;  %p345_p10 = scmp.lt.s32.totalorder (!%p305_p9), %s1653_s24, 31  ;;  %v1480_v6 = vld [vmem:[%s1891_s5 + $0x10] sm:$0xff] (!%p305_p9)   ;;  %v1481_v10 = vld [vmem:[%s1891_s5 + $0x18] sm:$0xff] (!%p305_p9)  }
  0x12   : > { %1335 = vmatpush3.bf16.msra.mxu0 (!%p305_p9), %v459_v3  ;;  %v1478_v4 = vld [vmem:[%s1891_s5] sm:$0xff] (!%p305_p9)   ;;  %v1483_v16 = vld [vmem:[%s1891_s5 + $0x28] sm:$0xff] (!%p305_p9)   ;;  %vm604_vm2 = vcmask (!%p305_p9), 130048   ;;  %v1484_v26 = vld [vmem:[%s1891_s5 + $0x30] sm:$0xff] (!%p305_p9)   ;;  %vm1064_vm3 = vcmask (!%p305_p9), 130112   ;;  %vm1071_vm4 = vcmask (!%p305_p9), 195712   ;;  %s1842_s22 = scalar_lea.hbm (!%p305_p9), %s1895_s9, %s1653_s24 }
  0x13   : > { %1352 = vmatprep.subr.bf16.mxu0 (!%p305_p9), %v1462_v2  ;;  %1370 = vmatprep.subr.bf16.mxu1 (!%p305_p9), %v1478_v4  ;;  %v1482_v11 = vld [vmem:[%s1891_s5 + $0x20] sm:$0xff] (!%p305_p9)   ;;  %v1485_v27 = vld [vmem:[%s1891_s5 + $0x38] sm:$0xff] (!%p305_p9)   ;;  %vm1078_vm5 = vcmask (!%p305_p9), 261312   ;;  %vm1085_vm6 = vcmask (!%p305_p9), 326912   ;;  %vm1092_vm7 = vcmask (!%p305_p9), 392512   ;;  %vm1099_vm8 = vcmask (!%p305_p9), 458112  }
  0x14   : > { %1371 = vmatpush3.bf16.msra.mxu1 (!%p305_p9), %v1478_v4  ;;  %v1287_v28 = vld [vmem:[%s1890_s4] ss:$0 sm:$0xff] (!%p305_p9)  ;;  %vm1106_vm9 = vcmask (!%p305_p9), 523712   ;;  %vm1113_vm10 = vcmask (!%p305_p9), 589312   ;;  %vm1120_vm11 = vcmask (!%p305_p9), 654912   ;;  %vm1127_vm12 = vcmask (!%p305_p9), 720512  }
  0x15   : > { %1372 = vmatprep.subr.bf16.mxu1 (!%p305_p9), %v1479_v5  ;;  %vm1134_vm13 = vcmask (!%p305_p9), 786112   ;;  %vm1141_vm14 = vcmask (!%p305_p9), 851712   ;;  %vm1148_vm15 = vcmask (!%p305_p9), 917312   ;;  %vm1155_vm0 = vcmask (!%p305_p9), 982912   ;;  %s1551_s26 = smov (!%p305_p9), [#allocation3]  }
  0x16   : > { %s1490_s27 = sshll.u32 (!%p305_p9), %s1551_s26, 4  ;;  %s1491_s27 = int_to_ptr.vmem [resolvable:$false] %s1490_s27 }
  0x17   : > { %s1492_s28 = scalar_lea.vmem (!%p305_p9), %s1491_s27, 32 }
  0x18   : > { %s346_s29 = scalar_select %p345_p10, %s1653_s24, 31  ;;  %1373 = vmatpush3.bf16.msra.mxu1 %v1479_v5 }
  0x19   : > { %1374 = vmatprep.subr.bf16.mxu1 %v1480_v6 }
  0x1a   : > { %s1251_s8 = sshll.u32 %s346_s29, 2 }
  0x1b   : > { %s1669_s18 = scalar_lea.vmem %s1887_s1, %s1251_s8  ;;  %s1689_s10 = scalar_lea.vmem %s1886_s0, %s1251_s8 }
  0x1c   : > { %v1461_v7 = vld [vmem:[%s1669_s18] sm:$0xff]   ;;  %v1463_v8 = vld [vmem:[%s1669_s18 + $0x8] sm:$0xff]   ;;  %v1464_v9 = vld [vmem:[%s1669_s18 + $0x10] sm:$0xff]   ;;  %1375 = vmatpush3.bf16.msra.mxu1 %v1480_v6 }
  0x1d   : > { %1336 = vmatprep.mubr.msk.bf16.mxu0 %vm432_vm1, %v1461_v7  ;;  %v1465_v12 = vld [vmem:[%s1669_s18 + $0x18] sm:$0xff]   ;;  %1376 = vmatprep.subr.bf16.mxu1 %v1481_v10  ;;  %v1466_v13 = vld [vmem:[%s1669_s18 + $0x20] sm:$0xff]   ;;  %v1467_v14 = vld [vmem:[%s1669_s18 + $0x28] sm:$0xff]  }
  0x1e   : > { %1337 = vmatmul.mubr.msk.bf16.vlgmr.msra.gmra.mrb[0].mxu0 %vm432_vm1, %v1463_v8  ;;  %v1468_v15 = vld [vmem:[%s1669_s18 + $0x30] sm:$0xff]   ;;  %v1469_v17 = vld [vmem:[%s1669_s18 + $0x38] sm:$0xff]   ;;  %v1470_v18 = vld [vmem:[%s1689_s10] sm:$0xff]  }
  0x1f   : > { %1353 = vmatpush3.bf16.msra.mxu0 %v1462_v2  ;;  %1340 = vmatprep.mubr.msk.bf16.mxu0 %vm432_vm1, %v1464_v9  ;;  %v1471_v19 = vld [vmem:[%s1689_s10 + $0x8] sm:$0xff]   ;;  %v1472_v20 = vld [vmem:[%s1689_s10 + $0x10] sm:$0xff]   ;;  %v1473_v21 = vld [vmem:[%s1689_s10 + $0x18] sm:$0xff]  }
  0x20   : > { %1377 = vmatpush3.bf16.msra.mxu1 %v1481_v10  ;;  %v1474_v22 = vld [vmem:[%s1689_s10 + $0x20] sm:$0xff]   ;;  %v1475_v23 = vld [vmem:[%s1689_s10 + $0x28] sm:$0xff]   ;;  %v1476_v24 = vld [vmem:[%s1689_s10 + $0x30] sm:$0xff]  }
  0x21   : > { %1378 = vmatprep.subr.bf16.mxu1 %v1482_v11  ;;  %v1477_v25 = vld [vmem:[%s1689_s10 + $0x38] sm:$0xff]   ;;  %s342_s10 = sand.u32 1, %s1540_s12  }
  0x22   : > { %s343_s15 = scalar_lea.vmem [#allocation3], %s342_s10  ;;  %s1167_s23 = scalar_lea.sflag [#allocation4], %s342_s10 }
  0x23   : > { %s1179_s8 = sshll.u32 %s343_s15, 4  ;;  %s1844_s8 = int_to_ptr.vmem [resolvable:$true] %s1179_s8 }
  0x24   : > { %1379 = vmatpush3.bf16.msra.mxu1 %v1482_v11  ;;  %s1486_s25 = scalar_lea.vmem %s1844_s8, 16  ;;  %p1493_p0 = scmp.lt.s32.totalorder %s1844_s8, %s1491_s27 }
  0x25   : > { %1380 = vmatprep.subr.bf16.mxu1 %v1483_v16  ;;  %p1487_p11 = scmp.ne.s32.totalorder %s1844_s8, %s1486_s25  ;;  %p1494_p1 = scmp.lt.s32.totalorder %s1492_s28, %s1486_s25 }
  0x26   : > { %1341 = vmatmul.mubr.msk.bf16.gmra.mrb[4].mxu0 %vm432_vm1, %v1465_v12 }
  0x27   : > { %1344 = vmatprep.mubr.msk.bf16.mxu0 %vm432_vm1, %v1466_v13  ;;  %p1488_p12 = pnand %p1487_p11, %p1640_p5  ;;  %p1495_p2 = por %p1494_p1, %p1493_p0 }
  0x28   : > { %1381 = vmatpush3.bf16.msra.mxu1 %v1483_v16 }
  0x29   : > { %1382 = vmatprep.subr.bf16.mxu1 %v1484_v26  ;;  %p1489_p13 = pneg %p1488_p12 }
  0x2b   : > { %p1496_p3 = pnand %p1495_p2, %p1489_p13 }
  0x2c   : > { %1383 = vmatpush3.bf16.msra.mxu1 %v1484_v26 }
  0x2d   : > { %1384 = vmatprep.subr.bf16.mxu1 %v1485_v27 }
  0x2e   : > { %1345 = vmatmul.mubr.msk.bf16.gmra.mrb[8].mxu0 %vm432_vm1, %v1467_v14 }
  0x2f   : > { %1348 = vmatprep.mubr.msk.bf16.mxu0 %vm432_vm1, %v1468_v15 }
  0x30   : > { %1385 = vmatpush3.bf16.msra.mxu1 %v1485_v27  ;;  %v1739_v27 = vld [vmem:[%s1892_s6] ss:$0 sm:$0xff] }
  0x36   : > { %1349 = vmatmul.mubr.msk.bf16.gmra.mrb[12].mxu0 %vm432_vm1, %v1469_v17  ;;  %vm1162_vm1 = vcmask 1048512  }
  0x37   : > { %1354 = vmatprep.mubr.msk.bf16.mxu0 %vm604_vm2, %v1470_v18 }
  0x3e   : > { %1355 = vmatmul.mubr.msk.bf16.vlgmr.msra.gmra.mrb[0].mxu0 %vm604_vm2, %v1471_v19 }
  0x3f   : > { %1358 = vmatprep.mubr.msk.bf16.mxu0 %vm604_vm2, %v1472_v20 }
  0x46   : > { %1359 = vmatmul.mubr.msk.bf16.gmra.mrb[4].mxu0 %vm604_vm2, %v1473_v21  ;;  %v1550_v21 = vmov 0  }
  0x47   : > { %1362 = vmatprep.mubr.msk.bf16.mxu0 %vm604_vm2, %v1474_v22  ;;  %1459 = vset.pattern.permute.xlu1 %v1550_v21  ;;  %v959_v22 = vlaneseq }
  0x48   : > { %1460 = vset.pattern.permute.xlu0 %v1550_v21 }
  0x4e   : > { %1363 = vmatmul.mubr.msk.bf16.gmra.mrb[8].mxu0 %vm604_vm2, %v1475_v23  ;;  %v1730_v23 = vshrl.u32 %v959_v22, 7 }
  0x4f   : > { %1366 = vmatprep.mubr.msk.bf16.mxu0 %vm604_vm2, %v1476_v24  ;;  %v957_v24 = vld [vmem:[%s1893_s7] sm:$0x1] }
  0x50   : > { %v961_v26 = vsub.s32 0, %v1730_v23 }
  0x56   : > { %1367 = vmatmul.mubr.msk.bf16.gmra.mrb[12].mxu0 %vm604_vm2, %v1477_v25  ;;  %v958_v25 = vunpack.c.l.bf16 %v957_v24 }
 0x111   : > { %v1356_v29 = vpop.f32.mrb[0].mxu0 }
 0x112   : > { %v735_v30 = vadd.f32 %v1356_v29, %v1287_v28  ;;  %v663_v31 = vpop.f32.mrb[1].mxu0 }
 0x113   : > { %v733_v32 = vadd.f32 %v1287_v28, %v663_v31  ;;  %v1357_v33 = vpop.f32.mrb[2].mxu0  ;;  %v1744_v31 = vrot.slane %v958_v25, %v961_v26 }
 0x114   : > { %v736_v34 = vadd.f32 %v1357_v33, %v1287_v28  ;;  %v666_v35 = vpop.f32.mrb[3].mxu0  ;;  %v751_v37 = vmax.f32 %v735_v30, 0.0 }
 0x115   : > { %v734_v36 = vadd.f32 %v1287_v28, %v666_v35  ;;  %v749_v39 = vmax.f32 %v733_v32, 0.0 }
 0x116   : > { %v752_v38 = vmax.f32 %v736_v34, 0.0 }
 0x117   : > { %v750_v40 = vmax.f32 %v734_v36, 0.0 }
 0x118   : > { %v766_v41 = vpack.c.bf16 %v752_v38, %v751_v37 }
 0x119   : > { %v1360_v42 = vpop.f32.mrb[4].mxu0  ;;  %v765_v43 = vpack.c.bf16 %v750_v40, %v749_v39 }
 0x11a   : > { %v739_v44 = vadd.f32 %v1360_v42, %v1287_v28  ;;  %v679_v45 = vpop.f32.mrb[5].mxu0 }
 0x11b   : > { %v737_v46 = vadd.f32 %v1287_v28, %v679_v45  ;;  %v1361_v47 = vpop.f32.mrb[6].mxu0  ;;  %1386 = vmatprep.mubr.bf16.mxu1 %v765_v43 }
 0x11c   : > { %v740_v48 = vadd.f32 %v1361_v47, %v1287_v28  ;;  %v682_v49 = vpop.f32.mrb[7].mxu0  ;;  %1387 = vmatmul.mubr.bf16.vlgmr.msra.gmra.mrb[0].mxu1 %v766_v41  ;;  %v755_v51 = vmax.f32 %v739_v44, 0.0 }
 0x11d   : > { %v738_v50 = vadd.f32 %v1287_v28, %v682_v49  ;;  %v753_v53 = vmax.f32 %v737_v46, 0.0 }
 0x11e   : > { %v756_v52 = vmax.f32 %v740_v48, 0.0 }
 0x11f   : > { %v754_v54 = vmax.f32 %v738_v50, 0.0 }
 0x120   : > { %v768_v55 = vpack.c.bf16 %v756_v52, %v755_v51 }
 0x121   : > { %v767_v56 = vpack.c.bf16 %v754_v54, %v753_v53  ;;  %v1364_v57 = vpop.f32.mrb[8].mxu0 }
 0x122   : > { %v743_v58 = vadd.f32 %v1364_v57, %v1287_v28  ;;  %v695_v59 = vpop.f32.mrb[9].mxu0 }
 0x123   : > { %v741_v60 = vadd.f32 %v1287_v28, %v695_v59  ;;  %v1365_v61 = vpop.f32.mrb[10].mxu0  ;;  %1390 = vmatprep.mubr.bf16.mxu1 %v767_v56 }
 0x124   : > { %v744_v62 = vadd.f32 %v1365_v61, %v1287_v28  ;;  %v698_v63 = vpop.f32.mrb[11].mxu0  ;;  %1391 = vmatmul.mubr.bf16.gmra.mrb[4].mxu1 %v768_v55  ;;  %v759_v1 = vmax.f32 %v743_v58, 0.0 }
 0x125   : > { %v742_v0 = vadd.f32 %v1287_v28, %v698_v63  ;;  %v757_v3 = vmax.f32 %v741_v60, 0.0 }
 0x126   : > { %v760_v2 = vmax.f32 %v744_v62, 0.0 }
 0x127   : > { %v758_v4 = vmax.f32 %v742_v0, 0.0 }
 0x128   : > { %v770_v5 = vpack.c.bf16 %v760_v2, %v759_v1 }
 0x129   : > { %v769_v6 = vpack.c.bf16 %v758_v4, %v757_v3  ;;  %v1368_v7 = vpop.f32.mrb[12].mxu0 }
 0x12a   : > { %v747_v8 = vadd.f32 %v1368_v7, %v1287_v28  ;;  %v711_v9 = vpop.f32.mrb[13].mxu0 }
 0x12b   : > { %v745_v10 = vadd.f32 %v1287_v28, %v711_v9  ;;  %v1369_v11 = vpop.f32.mrb[14].mxu0  ;;  %1394 = vmatprep.mubr.bf16.mxu1 %v769_v6 }
 0x12c   : > { %v748_v12 = vadd.f32 %v1369_v11, %v1287_v28  ;;  %v714_v13 = vpop.f32.mrb[15].mxu0  ;;  %1395 = vmatmul.mubr.bf16.gmra.mrb[8].mxu1 %v770_v5  ;;  %v763_v15 = vmax.f32 %v747_v8, 0.0 }
 0x12d   : > { %v746_v14 = vadd.f32 %v1287_v28, %v714_v13  ;;  %v761_v17 = vmax.f32 %v745_v10, 0.0 }
 0x12e   : > { %v764_v16 = vmax.f32 %v748_v12, 0.0 }
 0x12f   : > { %v762_v18 = vmax.f32 %v746_v14, 0.0 }
 0x130   : > { %v772_v19 = vpack.c.bf16 %v764_v16, %v763_v15 }
 0x131   : > { %v771_v20 = vpack.c.bf16 %v762_v18, %v761_v17  ;;  %v1011_v17 = vld [vmem:[#allocation2] sm:$0x1] }
 0x133   : > { %1398 = vmatprep.mubr.bf16.mxu1 %v771_v20 }
 0x134   : > { %1399 = vmatmul.mubr.bf16.gmra.mrb[12].mxu1 %v772_v19 }
 0x1ef   : > { %v1388_v28 = vpop.f32.mrb[0].mxu1 }
 0x1f0   : > { %v887_v29 = vadd.f32 %v1388_v28, %v1739_v27  ;;  %v878_v30 = vpop.f32.mrb[1].mxu1 }
 0x1f1   : > { %v879_v32 = vadd.f32 %v1739_v27, %v878_v30  ;;  %v1389_v33 = vpop.f32.mrb[2].mxu1 }
 0x1f2   : > { %v943_v34 = vmax.f32 %v887_v29, 0.0  ;;  %v890_v35 = vadd.f32 %v1389_v33, %v1739_v27  ;;  %v881_v36 = vpop.f32.mrb[3].mxu1 }
 0x1f3   : > { %v941_v37 = vmax.f32 %v879_v32, 0.0  ;;  %v882_v38 = vadd.f32 %v1739_v27, %v881_v36 }
 0x1f4   : > { %v944_v39 = vmax.f32 %v890_v35, 0.0  ;;  %v965_v40 = vmul.f32 %v1744_v31, %v943_v34 }
 0x1f5   : > { %v942_v41 = vmax.f32 %v882_v38, 0.0  ;;  %v963_v42 = vmul.f32 %v1744_v31, %v941_v37 }
 0x1f6   : > { %983 = vadd.xlane.f32.xlu1 %v965_v40  ;;  %v966_v46 = vmul.f32 %v1744_v31, %v944_v39 }
 0x1f7   : > { %979 = vadd.xlane.f32.xlu0 %v963_v42  ;;  %v1392_v43 = vpop.f32.mrb[4].mxu1  ;;  %v964_v49 = vmul.f32 %v1744_v31, %v942_v41  ;;  %v1778_v42 = vand.u32 127, %v959_v22 }
 0x1f8   : > { %v903_v44 = vadd.f32 %v1392_v43, %v1739_v27  ;;  %v894_v45 = vpop.f32.mrb[5].mxu1 }
 0x1f9   : > { %v895_v47 = vadd.f32 %v1739_v27, %v894_v45  ;;  %v1393_v48 = vpop.f32.mrb[6].mxu1  ;;  %v1057_v22 = vsub.s32 %v1778_v42, %v1730_v23 }
 0x1fa   : > { %v947_v50 = vmax.f32 %v903_v44, 0.0  ;;  %985 = vadd.xlane.f32.xlu1 %v966_v46  ;;  %v897_v51 = vpop.f32.mrb[7].mxu1  ;;  %v906_v55 = vadd.f32 %v1393_v48, %v1739_v27  ;;  %v1066_v46 = vadd.s32 4294967280, %v1778_v42 }
 0x1fb   : > { %v898_v52 = vadd.f32 %v1739_v27, %v897_v51  ;;  %981 = vadd.xlane.f32.xlu0 %v964_v49  ;;  %v945_v54 = vmax.f32 %v895_v47, 0.0 }
 0x1fc   : > { %v969_v53 = vmul.f32 %v1744_v31, %v947_v50  ;;  %v948_v60 = vmax.f32 %v906_v55, 0.0 }
 0x1fd   : > { %v946_v56 = vmax.f32 %v898_v52, 0.0  ;;  %v967_v63 = vmul.f32 %v1744_v31, %v945_v54  ;;  %v1069_v52 = vsub.s32 %v1066_v46, %v1730_v23  ;;  %v1073_v54 = vadd.s32 4294967272, %v1778_v42 }
 0x1fe   : > { %v970_v5 = vmul.f32 %v1744_v31, %v948_v60 }
 0x1ff   : > { %991 = vadd.xlane.f32.xlu0 %v969_v53  ;;  %v1396_v57 = vpop.f32.mrb[8].mxu1  ;;  %v968_v58 = vmul.f32 %v1744_v31, %v946_v56  ;;  %v1076_v60 = vsub.s32 %v1073_v54, %v1730_v23 }
 0x200   : > { %v910_v59 = vpop.f32.mrb[9].mxu1  ;;  %v919_v61 = vadd.f32 %v1396_v57, %v1739_v27  ;;  %v1080_v57 = vadd.s32 4294967264, %v1778_v42 }
 0x201   : > { %989 = vadd.xlane.f32.xlu1 %v968_v58  ;;  %v1397_v62 = vpop.f32.mrb[10].mxu1  ;;  %v911_v4 = vadd.f32 %v1739_v27, %v910_v59 }
 0x202   : > { %v922_v0 = vadd.f32 %v1397_v62, %v1739_v27  ;;  %v913_v1 = vpop.f32.mrb[11].mxu1  ;;  %v951_v3 = vmax.f32 %v919_v61, 0.0  ;;  %v1087_v61 = vadd.s32 4294967256, %v1778_v42 }
 0x203   : > { %987 = vadd.xlane.f32.xlu0 %v967_v63  ;;  %v949_v9 = vmax.f32 %v911_v4, 0.0  ;;  %v914_v10 = vadd.f32 %v1739_v27, %v913_v1 }
 0x204   : > { %v952_v2 = vmax.f32 %v922_v0, 0.0  ;;  %v973_v12 = vmul.f32 %v1744_v31, %v951_v3  ;;  %v1083_v0 = vsub.s32 %v1080_v57, %v1730_v23  ;;  %v1094_v3 = vadd.s32 4294967248, %v1778_v42 }
 0x205   : > { %v950_v14 = vmax.f32 %v914_v10, 0.0  ;;  %v971_v16 = vmul.f32 %v1744_v31, %v949_v9  ;;  %v1101_v9 = vadd.s32 4294967240, %v1778_v42 }
 0x206   : > { %v974_v6 = vmul.f32 %v1744_v31, %v952_v2 }
 0x207   : > { %993 = vadd.xlane.f32.xlu0 %v970_v5  ;;  %v1400_v7 = vpop.f32.mrb[12].mxu1  ;;  %v972_v20 = vmul.f32 %v1744_v31, %v950_v14 }
 0x208   : > { %v926_v8 = vpop.f32.mrb[13].mxu1  ;;  %v935_v15 = vadd.f32 %v1400_v7, %v1739_v27 }
 0x209   : > { %v1401_v11 = vpop.f32.mrb[14].mxu1  ;;  %v927_v19 = vadd.f32 %v1739_v27, %v926_v8  ;;  %v1097_v8 = vsub.s32 %v1094_v3, %v1730_v23 }
 0x20a   : > { %v929_v13 = vpop.f32.mrb[15].mxu1  ;;  %v955_v18 = vmax.f32 %v935_v15, 0.0  ;;  %v938_v28 = vadd.f32 %v1401_v11, %v1739_v27  ;;  %v1115_v15 = vadd.s32 4294967224, %v1778_v42 }
 0x20b   : > { %999 = vadd.xlane.f32.xlu0 %v973_v12  ;;  %v953_v21 = vmax.f32 %v927_v19, 0.0  ;;  %v930_v24 = vadd.f32 %v1739_v27, %v929_v13  ;;  %v1108_v12 = vadd.s32 4294967232, %v1778_v42 }
 0x20c   : > { %v977_v25 = vmul.f32 %v1744_v31, %v955_v18  ;;  %v956_v32 = vmax.f32 %v938_v28, 0.0 }
 0x20d   : > { %v954_v29 = vmax.f32 %v930_v24, 0.0  ;;  %v975_v30 = vmul.f32 %v1744_v31, %v953_v21  ;;  %v1118_v24 = vsub.s32 %v1115_v15, %v1730_v23 }
 0x20e   : > { %v978_v34 = vmul.f32 %v1744_v31, %v956_v32 }
 0x20f   : > { %995 = vadd.xlane.f32.xlu0 %v971_v16  ;;  %v976_v33 = vmul.f32 %v1744_v31, %v954_v29  ;;  %v1059_v31 = vadd.s32 4294967288, %v1778_v42  ;;  %v1122_v29 = vadd.s32 4294967216, %v1778_v42 }
 0x211   : > { %v1062_v50 = vsub.s32 %v1059_v31, %v1730_v23 }
 0x212   : > { %1014 = vperm.xlu1 %1459, %v1011_v17   ;;  %v1104_v17 = vsub.s32 %v1101_v9, %v1730_v23 }
 0x213   : > { %997 = vadd.xlane.f32.xlu0 %v972_v20  ;;  %v1111_v20 = vsub.s32 %v1108_v12, %v1730_v23 }
 0x217   : > { %1007 = vadd.xlane.f32.xlu0 %v977_v25 }
 0x21b   : > { %1003 = vadd.xlane.f32.xlu0 %v975_v30 }
 0x21f   : > { %1005 = vadd.xlane.f32.xlu0 %v976_v33  ;;  %v1129_v33 = vadd.s32 4294967208, %v1778_v42 }
 0x223   : > { %1009 = vadd.xlane.f32.xlu0 %v978_v34 }
 0x236   : > { %1001 = vadd.xlane.f32.xlu1 %v974_v6  ;;  %v1090_v6 = vsub.s32 %v1087_v61, %v1730_v23 }
 0x283   : > { %v984_v38 = vpop.xlane.xlu1 %983 }
 0x284   : > { %v980_v35 = vpop.xlane.xlu0 %979 }
 0x287   : > { %v986_v40 = vpop.xlane.xlu1 %985 }
 0x288   : > { %v982_v36 = vpop.xlane.xlu0 %981 }
 0x28c   : > { %v992_v37 = vpop.xlane.xlu0 %991 }
 0x28e   : > { %v990_v41 = vpop.xlane.xlu1 %989 }
 0x290   : > { %v988_v39 = vpop.xlane.xlu0 %987 }
 0x292   : > { %v1015_v43 = vpop.permute.xlu1 %1014 }
 0x293   : > { %v1784_v45 = vrot.slane %v1015_v43, %v961_v26  ;;  %v1132_v43 = vsub.s32 %v1129_v33, %v1730_v23 }
 0x294   : > { %v994_v27 = vpop.xlane.xlu0 %993 }
 0x295   : > { %v1021_v48 = vadd.f32 %v1784_v45, %v980_v35  ;;  %v1022_v49 = vadd.f32 %v1784_v45, %v982_v36  ;;  %v1023_v51 = vadd.f32 %v1784_v45, %v984_v38  ;;  %v1024_v58 = vadd.f32 %v1784_v45, %v986_v40 }
 0x296   : > { %v1025_v62 = vadd.f32 %v1784_v45, %v988_v39  ;;  %v1026_v4 = vadd.f32 %v1784_v45, %v990_v41  ;;  %v1027_v10 = vadd.f32 %v1784_v45, %v992_v37  ;;  %v1028_v18 = vadd.f32 %v1784_v45, %v994_v27 }
 0x297   : > { %v1058_v26 = vrot.slane %v1021_v48, %v1057_v22  ;;  %v1063_v53 = vrot.slane %v1022_v49, %v1062_v50  ;;  %v1070_v56 = vrot.slane %v1023_v51, %v1069_v52  ;;  %v1077_v2 = vrot.slane %v1024_v58, %v1076_v60 }
 0x298   : > { %v1780_v44 = vpop.xlane.xlu0 %999  ;;  %v1084_v7 = vrot.slane %v1025_v62, %v1083_v0  ;;  %v1091_v14 = vrot.slane %v1026_v4, %v1090_v6  ;;  %v1098_v19 = vrot.slane %v1027_v10, %v1097_v8  ;;  %v1105_v32 = vrot.slane %v1028_v18, %v1104_v17 }
 0x299   : > { %v1065_v59 = vsel %vm1064_vm3, %v1063_v53, %v1058_v26  ;;  %v1136_v35 = vadd.s32 4294967200, %v1778_v42  ;;  %v1143_v38 = vadd.s32 4294967192, %v1778_v42  ;;  %v1125_v39 = vsub.s32 %v1122_v29, %v1730_v23 }
 0x29a   : > { %v1072_v63 = vsel %vm1071_vm4, %v1070_v56, %v1065_v59  ;;  %v1031_v40 = vadd.f32 %v1784_v45, %v1780_v44  ;;  %v1150_v41 = vadd.s32 4294967184, %v1778_v42  ;;  %v1157_v27 = vadd.s32 4294967176, %v1778_v42 }
 0x29b   : > { %v1079_v5 = vsel %vm1078_vm5, %v1077_v2, %v1072_v63  ;;  %v1139_v46 = vsub.s32 %v1136_v35, %v1730_v23  ;;  %v1146_v50 = vsub.s32 %v1143_v38, %v1730_v23 }
 0x29c   : > { %v996_v47 = vpop.xlane.xlu0 %995  ;;  %v1086_v11 = vsel %vm1085_vm6, %v1084_v7, %v1079_v5  ;;  %v1126_v42 = vrot.slane %v1031_v40, %v1125_v39  ;;  %v1153_v52 = vsub.s32 %v1150_v41, %v1730_v23  ;;  %v1160_v53 = vsub.s32 %v1157_v27, %v1730_v23 }
 0x29d   : > { %v1093_v16 = vsel %vm1092_vm7, %v1091_v14, %v1086_v11  ;;  %v1029_v21 = vadd.f32 %v1784_v45, %v996_v47 }
 0x29e   : > { %v1100_v28 = vsel %vm1099_vm8, %v1098_v19, %v1093_v16 }
 0x29f   : > { %v1112_v34 = vrot.slane %v1029_v21, %v1111_v20  ;;  %v1107_v36 = vsel %vm1106_vm9, %v1105_v32, %v1100_v28 }
 0x2a0   : > { %v998_v55 = vpop.xlane.xlu0 %997 }
 0x2a1   : > { %v1030_v25 = vadd.f32 %v1784_v45, %v998_v55  ;;  %v1114_v31 = vsel %vm1113_vm10, %v1112_v34, %v1107_v36 }
 0x2a3   : > { %v1119_v37 = vrot.slane %v1030_v25, %v1118_v24 }
 0x2a4   : > { %v1008_v1 = vpop.xlane.xlu0 %1007 }
 0x2a5   : > { %v1121_v22 = vsel %vm1120_vm11, %v1119_v37, %v1114_v31  ;;  %v1035_v26 = vadd.f32 %v1784_v45, %v1008_v1 }
 0x2a6   : > { %v1128_v57 = vsel %vm1127_vm12, %v1126_v42, %v1121_v22 }
 0x2a7   : > { %v1154_v60 = vrot.slane %v1035_v26, %v1153_v52 }
 0x2a8   : > { %v1004_v13 = vpop.xlane.xlu0 %1003 }
 0x2a9   : > { %v1033_v47 = vadd.f32 %v1784_v45, %v1004_v13 }
 0x2ab   : > { %v1140_v56 = vrot.slane %v1033_v47, %v1139_v46 }
 0x2ac   : > { %v1006_v30 = vpop.xlane.xlu0 %1005 }
 0x2ad   : > { %v1034_v44 = vadd.f32 %v1784_v45, %v1006_v30 }
 0x2af   : > { %v1147_v58 = vrot.slane %v1034_v44, %v1146_v50 }
 0x2b0   : > { %v1010_v48 = vpop.xlane.xlu0 %1009 }
 0x2b1   : > { %v1036_v54 = vadd.f32 %v1784_v45, %v1010_v48 }
 0x2b3   : > { %v1161_v23 = vrot.slane %v1036_v54, %v1160_v53 }
 0x2c3   : > { %v1002_v49 = vpop.xlane.xlu1 %1001 }
 0x2c4   : > { %v1032_v51 = vadd.f32 %v1784_v45, %v1002_v49 }
 0x2c6   : > { %v1133_v55 = vrot.slane %v1032_v51, %v1132_v43 }
 0x2c8   : > { %v1135_v59 = vsel %vm1134_vm13, %v1133_v55, %v1128_v57 }
 0x2c9   : > { %v1142_v61 = vsel %vm1141_vm14, %v1140_v56, %v1135_v59 }
 0x2ca   : > { %v1149_v62 = vsel %vm1148_vm15, %v1147_v58, %v1142_v61 }
 0x2cb   : > { %v1156_v45 = vsel %vm1155_vm0, %v1154_v60, %v1149_v62 }
 0x2cc   : > { %v1163_v63 = vsel %vm1162_vm1, %v1161_v23, %v1156_v45 }
 0x2cd   : > { %1165 = vst [vmem:[%s343_s15] sm:$0x1] %v1163_v63 }
 0x2ce   : > { %1499 = shalt.err (!%p1496_p3)
}
 0x2cf   : > { %s1500_s24 = scalar_lea.hbm %s1842_s22, 16  ;;  %s1504_s10 = scalar_lea.hbm %s1895_s9, 32 }
 0x2d0   : > { %p1501_p4 = scmp.ne.s32.totalorder %s1842_s22, %s1500_s24  ;;  %p1505_p9 = scmp.lt.u32.totalorder %s1842_s22, %s1895_s9 }
 0x2d1   : > { %p1506_p10 = scmp.lt.u32.totalorder %s1504_s10, %s1500_s24  ;;  %p1508_p12 = scmp.lt.u32.totalorder %s1500_s24, %s1842_s22 }
 0x2d2   : > { %p1502_p7 = pnand %p1501_p4, %p1640_p5 }
 0x2d3   : > { %p1507_p11 = por %p1506_p10, %p1505_p9 }
 0x2d4   : > { %p1503_p8 = pneg %p1502_p7 }
 0x2d5   : > { %p1509_p13 = por %p1508_p12, %p1507_p11 }
 0x2d7   : > { %p1510_p0 = pnand %p1509_p13, %p1503_p8 }
 0x2d9   : > { %1513 = shalt.err (!%p1510_p0)
}
 0x2da   : > { %1419 = dma.vmem_to_hbm [thread:$0]  (%p1640_p5), %s1844_s8, 16, %s1842_s22, %s1167_s23  }
 0x2db PF: > { %p1425_p1 = scmp.ge.s32.totalorder %s1548_s14, 2  ;;  %s1191_s18 = sand.u32 1, %s1536_s11  }
 0x2dc   : > { %s1192_s25 = scalar_lea.sflag [#allocation4], %s1191_s18 }
 0x2dd   : > { %p1422_p2 = pnand %p1425_p1, %p1644_p6 }
 0x2df   : > { %1531 = dma.done.wait (!%p1422_p2), %s1192_s25, 16  }
 0x2e0   : > { %1533 = vsyncadd (!%p1422_p2), %s1192_s25, 4294967280  ;;  %p21_p3 = scmp.ge.s32.totalorder %s1628_s16, 4   ;;  %s1898_s11 = smov %s1540_s12 }
 0x2e1   : > { %s1899_s12 = smov %s1544_s13  ;;  %s1900_s13 = smov %s1638_s19 }
 0x2e2   : > { %s1901_s14 = smov %s1628_s16  ;;  %23 = sbr.rel (!%p21_p3) target bundleno = 6 (0x6), region = 94 }
 0x2e9   :  { %1196 = vsyncpa [#allocation4], 1 }
 0x2ea   :  { %1198 = vsyncpa [#allocation4 + $0x1], 1 }

</bundles_post_ra>
